<compile_context>
chip_gen: v6e
topology: v6e:2x2x1
jax: 0.10.0
libtpu: 0.0.40
codegen_flags: <defaults>
</compile_context>

<pallas_src>
import jax
import jax.numpy as jnp
from jax.experimental import pallas as pl
from jax.experimental.pallas import tpu as pltpu

LANES = 128        # vreg lane width
TM_MAX = 1024      # rows per grid step (multiple of 32 so int8/bf16/f32 blocks all tile)
NCORES = 2         # leading "parallel" grid axis (v7x has 2 TensorCores per chip)
ALPHA = 1.0
BETA = 1.1
IGNORE_PAD = 2     # any value != {0,1} contributes nothing; fits int8


def _round_up(v, m):
    return ((v + m - 1) // m) * m


def _make_stats_kernel(tm, n_valid_rows, need_mask):
    """Build the accumulation kernel for a given block height / valid row count."""

    def _stats_kernel(x_ref, y_ref, stats_ref):
        # stats_ref: (4, LANES) f32, resident across the inner (arbitrary) grid axis.
        #   row 0: count of positive (label==1) elements per lane
        #   row 1: count of negative (label==0) elements per lane
        #   row 2: sum of BCE(x, target=1) over positive elements per lane
        #   row 3: sum of BCE(x, target=0) over negative elements per lane
        c = pl.program_id(0)
        i = pl.program_id(1)

        @pl.when(i == 0)
        def _():
            stats_ref[...] = jnp.zeros_like(stats_ref)

        x = x_ref[...].astype(jnp.float32)   # logits (tm, 128)
        y = y_ref[...].astype(jnp.int32)     # labels (tm, 128), sign-extended from int8/int32

        pos = y == 1
        neg = y == 0

        if need_mask:
            # Mask rows that fall outside the real array (partial last block and the
            # redundant clamped block(s) visited by the second "core" slice). The mask
            # is built from the *unclamped* block index.
            row0 = (c * pl.num_programs(1) + i) * tm
            row_ids = jax.lax.broadcasted_iota(jnp.int32, (tm, LANES), 0) + row0
            valid = row_ids < n_valid_rows
            pos = jnp.logical_and(pos, valid)
            neg = jnp.logical_and(neg, valid)

        # Numerically stable BCE-with-logits: max(x,0) - x*t + log(1 + exp(-|x|))
        softplus = jnp.log1p(jnp.exp(-jnp.abs(x)))   # EUP work, hidden under DMA
        bce_neg = jnp.maximum(x, 0.0) + softplus     # target = 0
        bce_pos = bce_neg - x                        # target = 1

        f32 = jnp.float32
        stats_ref[0:1] += jnp.sum(pos.astype(f32), axis=0, keepdims=True)
        stats_ref[1:2] += jnp.sum(neg.astype(f32), axis=0, keepdims=True)
        stats_ref[2:3] += jnp.sum(jnp.where(pos, bce_pos, 0.0), axis=0, keepdims=True)
        stats_ref[3:4] += jnp.sum(jnp.where(neg, bce_neg, 0.0), axis=0, keepdims=True)

    return _stats_kernel


def consensus_binary_edge_loss(edge, edge_label, loss_weight=1.0):
    numel = edge.size

    # Logits: keep floating dtypes as-is (cast to f32 in-register inside the kernel).
    x = edge if jnp.issubdtype(edge.dtype, jnp.floating) else edge.astype(jnp.float32)

    # Labels: keep them 1 byte wide whenever possible. uint8 is bitcast (free) to int8;
    # 255 becomes -1, which is neither 0 nor 1 and therefore still contributes nothing,
    # matching the reference where only {0,1} get nonzero weight.
    y = edge_label
    if y.dtype == jnp.uint8:
        y = jax.lax.bitcast_convert_type(y, jnp.int8)
    elif y.dtype == jnp.uint32:
        y = jax.lax.bitcast_convert_type(y, jnp.int32)
    elif y.dtype not in (jnp.int8, jnp.int32):
        y = y.astype(jnp.int32)

    x = x.reshape(-1)
    y = y.reshape(-1)
    rem = numel % LANES
    if rem:  # only pad when needed (at most 127 elements); common image shapes skip this
        pad = LANES - rem
        x = jnp.pad(x, (0, pad))
        y = jnp.pad(y, (0, pad), constant_values=IGNORE_PAD)
    x = x.reshape(-1, LANES)
    y = y.reshape(-1, LANES)
    rows = x.shape[0]

    tm = min(TM_MAX, _round_up(rows, 32))      # multiple of 32: valid for int8/bf16/f32 blocks
    nblocks = pl.cdiv(rows, tm)
    ncores = min(NCORES, nblocks)              # don't spawn redundant core slices for tiny inputs
    bpc = pl.cdiv(nblocks, ncores)             # row-blocks handled per "core" slice
    need_mask = (ncores * bpc * tm) != rows    # exact tiling -> skip in-kernel row mask

    def in_map(c, i):
        # Clamp so a core's trailing blocks never index past the array; the kernel's
        # row mask (built from the *unclamped* block index) zeroes their contribution.
        return (jnp.minimum(c * bpc + i, nblocks - 1), 0)

    stats = pl.pallas_call(
        _make_stats_kernel(tm, rows, need_mask),
        out_shape=jax.ShapeDtypeStruct((ncores, 4, LANES), jnp.float32),
        grid_spec=pltpu.PrefetchScalarGridSpec(
            num_scalar_prefetch=0,
            grid=(ncores, bpc),
            in_specs=[
                pl.BlockSpec((tm, LANES), in_map),
                pl.BlockSpec((tm, LANES), in_map),
            ],
            out_specs=pl.BlockSpec((None, 4, LANES), lambda c, i: (c, 0, 0)),
        ),
        compiler_params=pltpu.CompilerParams(
            dimension_semantics=("parallel", "arbitrary")),
    )(x, y)

    # O(1) scalar glue: class weights from global counts + 'mean' reduction.
    pos_num = jnp.sum(stats[:, 0])
    neg_num = jnp.sum(stats[:, 1])
    pos_bce = jnp.sum(stats[:, 2])
    neg_bce = jnp.sum(stats[:, 3])
    sum_num = pos_num + neg_num                 # NaN if every element is ignored (same as reference)
    w_pos = ALPHA * neg_num / sum_num
    w_neg = BETA * pos_num / sum_num
    loss = (w_pos * pos_bce + w_neg * neg_bce) / numel
    return loss_weight * loss


def _reference(edge, edge_label, loss_weight=1.0, alpha=ALPHA, beta=BETA):
    """Pure-JAX reference mirroring the PyTorch weighted_binary_loss."""
    x = edge.astype(jnp.float32)
    y = edge_label.astype(jnp.float32)
    pos = y == 1.0
    neg = y == 0.0
    pos_num = jnp.sum(pos).astype(jnp.float32)
    neg_num = jnp.sum(neg).astype(jnp.float32)
    sum_num = pos_num + neg_num
    weight = jnp.where(pos, alpha * neg_num / sum_num,
                       jnp.where(neg, beta * pos_num / sum_num, 0.0))
    bce = jnp.maximum(x, 0.0) - x * y + jnp.log1p(jnp.exp(-jnp.abs(x)))
    return loss_weight * jnp.mean(weight * bce)


if __name__ == "__main__":
    key = jax.random.PRNGKey(0)
    k_edge, k_lab = jax.random.split(key)

    # NCHW edge logits + {0, 1, 255} uint8 labels (255 = ignore).
    shape = (2, 1, 32, 32)
    edge = 2.0 * jax.random.normal(k_edge, shape, dtype=jnp.float32)
    u = jax.random.uniform(k_lab, shape)
    edge_label = jnp.where(u < 0.3, 1, jnp.where(u < 0.9, 0, 255)).astype(jnp.uint8)

    out = consensus_binary_edge_loss(edge, edge_label, loss_weight=1.0)
    out = jax.block_until_ready(out)

    ref = _reference(edge, edge_label, loss_weight=1.0)
    assert jnp.allclose(out, ref, rtol=1e-5, atol=1e-6), (out, ref)
    print("KERNEL_OK")
</pallas_src>

<mosaic_0001>
module attributes {stable_mosaic.version = 11 : i64} {
  func.func @_stats_kernel(%arg0: i32, %arg1: i32, %arg2: memref<32x128xf32, #tpu.memory_space<vmem>>, %arg3: memref<32x128xi8, #tpu.memory_space<vmem>>, %arg4: memref<1x4x128xf32, #tpu.memory_space<vmem>>) attributes {dimension_semantics = [#tpu.dimension_semantics<parallel>, #tpu.dimension_semantics<arbitrary>], iteration_bounds = array<i64: 1, 1>, scalar_prefetch = 0 : i64, scratch_operands = 0 : i64, tpu.core_type = #tpu.core_type<tc>, window_params = [{transform_indices = @transform_0, window_bounds = array<i64: 32, 128>}, {transform_indices = @transform_1, window_bounds = array<i64: 32, 128>}, {transform_indices = @transform_2, window_bounds = array<i64: 1, 4, 128>}]} {
    %c0_i32 = arith.constant 0 : i32
    %0 = arith.cmpi eq, %arg1, %c0_i32 : i32
    %1 = arith.extui %0 : i1 to i32
    %c0_i32_0 = arith.constant 0 : i32
    %2 = arith.cmpi ne, %1, %c0_i32_0 : i32
    scf.if %2 {
      %cst_34 = arith.constant 0.000000e+00 : f32
      %69 = vector.broadcast %cst_34 : f32 to vector<4x128xf32>
      %c0_35 = arith.constant 0 : index
      %c0_36 = arith.constant 0 : index
      %c0_37 = arith.constant 0 : index
      %70 = vector.load %arg4[%c0_35, %c0_36, %c0_37] : memref<1x4x128xf32, #tpu.memory_space<vmem>>, vector<1x4x128xf32>
      %71 = vector.shape_cast %70 : vector<1x4x128xf32> to vector<4x128xf32>
      %72 = vector.shape_cast %69 : vector<4x128xf32> to vector<1x4x128xf32>
      tpu.vector_store %arg4[%c0_35, %c0_36, %c0_37], %72 {strides = array<i32>} : memref<1x4x128xf32, #tpu.memory_space<vmem>>, vector<1x4x128xf32>,
    } else {
    }
    %c0 = arith.constant 0 : index
    %c0_1 = arith.constant 0 : index
    %3 = vector.load %arg2[%c0, %c0_1] : memref<32x128xf32, #tpu.memory_space<vmem>>, vector<32x128xf32>
    %c0_2 = arith.constant 0 : index
    %c0_3 = arith.constant 0 : index
    %4 = vector.load %arg3[%c0_2, %c0_3] : memref<32x128xi8, #tpu.memory_space<vmem>>, vector<32x128xi8>
    %5 = arith.extsi %4 : vector<32x128xi8> to vector<32x128xi32>
    %c1_i32 = arith.constant 1 : i32
    %6 = vector.broadcast %c1_i32 : i32 to vector<32x128xi32>
    %7 = arith.cmpi eq, %5, %6 : vector<32x128xi32>
    %c0_i32_4 = arith.constant 0 : i32
    %8 = vector.broadcast %c0_i32_4 : i32 to vector<32x128xi32>
    %9 = arith.cmpi eq, %5, %8 : vector<32x128xi32>
    %c1_i32_5 = arith.constant 1 : i32
    %10 = arith.muli %arg0, %c1_i32_5 : i32
    %11 = arith.addi %10, %arg1 : i32
    %c32_i32 = arith.constant 32 : i32
    %12 = arith.muli %11, %c32_i32 : i32
    %13 = tpu.iota {dimensions = array<i32: 0>} : vector<32x128xi32>
    %14 = vector.broadcast %12 : i32 to vector<32x128xi32>
    %15 = arith.addi %13, %14 : vector<32x128xi32>
    %c16_i32 = arith.constant 16 : i32
    %16 = vector.broadcast %c16_i32 : i32 to vector<32x128xi32>
    %17 = arith.cmpi slt, %15, %16 : vector<32x128xi32>
    %18 = arith.andi %7, %17 : vector<32x128xi1>
    %19 = arith.andi %9, %17 : vector<32x128xi1>
    %20 = math.absf %3 : vector<32x128xf32>
    %cst = arith.constant 0.000000e+00 : f32
    %21 = vector.broadcast %cst : f32 to vector<32x128xf32>
    %22 = arith.subf %21, %20 : vector<32x128xf32>
    %23 = math.exp %22 : vector<32x128xf32>
    %24 = math.log1p %23 : vector<32x128xf32>
    %cst_6 = arith.constant 0.000000e+00 : f32
    %25 = vector.broadcast %cst_6 : f32 to vector<32x128xf32>
    %26 = arith.maximumf %3, %25 : vector<32x128xf32>
    %27 = arith.addf %26, %24 : vector<32x128xf32>
    %28 = arith.subf %27, %3 : vector<32x128xf32>
    %c0_7 = arith.constant 0 : index
    %c0_8 = arith.constant 0 : index
    %c0_9 = arith.constant 0 : index
    %29 = vector.load %arg4[%c0_7, %c0_8, %c0_9] : memref<1x4x128xf32, #tpu.memory_space<vmem>>, vector<1x1x128xf32>
    %30 = vector.shape_cast %29 : vector<1x1x128xf32> to vector<1x128xf32>
    %31 = arith.extui %18 : vector<32x128xi1> to vector<32x128xi32>
    %32 = arith.sitofp %31 : vector<32x128xi32> to vector<32x128xf32>
    %cst_10 = arith.constant dense<0.000000e+00> : vector<128xf32>
    %33 = vector.multi_reduction <add>, %32, %cst_10 [0] : vector<32x128xf32> to vector<128xf32>
    %34 = vector.shape_cast %33 : vector<128xf32> to vector<1x128xf32>
    %35 = arith.addf %30, %34 : vector<1x128xf32>
    %c0_11 = arith.constant 0 : index
    %c0_12 = arith.constant 0 : index
    %c0_13 = arith.constant 0 : index
    %36 = vector.load %arg4[%c0_11, %c0_12, %c0_13] : memref<1x4x128xf32, #tpu.memory_space<vmem>>, vector<1x1x128xf32>
    %37 = vector.shape_cast %36 : vector<1x1x128xf32> to vector<1x128xf32>
    %38 = vector.shape_cast %35 : vector<1x128xf32> to vector<1x1x128xf32>
    tpu.vector_store %arg4[%c0_11, %c0_12, %c0_13], %38 {strides = array<i32>} : memref<1x4x128xf32, #tpu.memory_space<vmem>>, vector<1x1x128xf32>,
    %c0_14 = arith.constant 0 : index
    %c1 = arith.constant 1 : index
    %c0_15 = arith.constant 0 : index
    %39 = vector.load %arg4[%c0_14, %c1, %c0_15] : memref<1x4x128xf32, #tpu.memory_space<vmem>>, vector<1x1x128xf32>
    %40 = vector.shape_cast %39 : vector<1x1x128xf32> to vector<1x128xf32>
    %41 = arith.extui %19 : vector<32x128xi1> to vector<32x128xi32>
    %42 = arith.sitofp %41 : vector<32x128xi32> to vector<32x128xf32>
    %cst_16 = arith.constant dense<0.000000e+00> : vector<128xf32>
    %43 = vector.multi_reduction <add>, %42, %cst_16 [0] : vector<32x128xf32> to vector<128xf32>
    %44 = vector.shape_cast %43 : vector<128xf32> to vector<1x128xf32>
    %45 = arith.addf %40, %44 : vector<1x128xf32>
    %c0_17 = arith.constant 0 : index
    %c1_18 = arith.constant 1 : index
    %c0_19 = arith.constant 0 : index
    %46 = vector.load %arg4[%c0_17, %c1_18, %c0_19] : memref<1x4x128xf32, #tpu.memory_space<vmem>>, vector<1x1x128xf32>
    %47 = vector.shape_cast %46 : vector<1x1x128xf32> to vector<1x128xf32>
    %48 = vector.shape_cast %45 : vector<1x128xf32> to vector<1x1x128xf32>
    tpu.vector_store %arg4[%c0_17, %c1_18, %c0_19], %48 {strides = array<i32>} : memref<1x4x128xf32, #tpu.memory_space<vmem>>, vector<1x1x128xf32>,
    %c0_20 = arith.constant 0 : index
    %c2 = arith.constant 2 : index
    %c0_21 = arith.constant 0 : index
    %49 = vector.load %arg4[%c0_20, %c2, %c0_21] : memref<1x4x128xf32, #tpu.memory_space<vmem>>, vector<1x1x128xf32>
    %50 = vector.shape_cast %49 : vector<1x1x128xf32> to vector<1x128xf32>
    %cst_22 = arith.constant 0.000000e+00 : f32
    %51 = vector.broadcast %cst_22 : f32 to vector<32x128xf32>
    %52 = arith.select %18, %28, %51 : vector<32x128xi1>, vector<32x128xf32>
    %cst_23 = arith.constant dense<0.000000e+00> : vector<128xf32>
    %53 = vector.multi_reduction <add>, %52, %cst_23 [0] : vector<32x128xf32> to vector<128xf32>
    %54 = vector.shape_cast %53 : vector<128xf32> to vector<1x128xf32>
    %55 = arith.addf %50, %54 : vector<1x128xf32>
    %c0_24 = arith.constant 0 : index
    %c2_25 = arith.constant 2 : index
    %c0_26 = arith.constant 0 : index
    %56 = vector.load %arg4[%c0_24, %c2_25, %c0_26] : memref<1x4x128xf32, #tpu.memory_space<vmem>>, vector<1x1x128xf32>
    %57 = vector.shape_cast %56 : vector<1x1x128xf32> to vector<1x128xf32>
    %58 = vector.shape_cast %55 : vector<1x128xf32> to vector<1x1x128xf32>
    tpu.vector_store %arg4[%c0_24, %c2_25, %c0_26], %58 {strides = array<i32>} : memref<1x4x128xf32, #tpu.memory_space<vmem>>, vector<1x1x128xf32>,
    %c0_27 = arith.constant 0 : index
    %c3 = arith.constant 3 : index
    %c0_28 = arith.constant 0 : index
    %59 = vector.load %arg4[%c0_27, %c3, %c0_28] : memref<1x4x128xf32, #tpu.memory_space<vmem>>, vector<1x1x128xf32>
    %60 = vector.shape_cast %59 : vector<1x1x128xf32> to vector<1x128xf32>
    %cst_29 = arith.constant 0.000000e+00 : f32
    %61 = vector.broadcast %cst_29 : f32 to vector<32x128xf32>
    %62 = arith.select %19, %27, %61 : vector<32x128xi1>, vector<32x128xf32>
    %cst_30 = arith.constant dense<0.000000e+00> : vector<128xf32>
    %63 = vector.multi_reduction <add>, %62, %cst_30 [0] : vector<32x128xf32> to vector<128xf32>
    %64 = vector.shape_cast %63 : vector<128xf32> to vector<1x128xf32>
    %65 = arith.addf %60, %64 : vector<1x128xf32>
    %c0_31 = arith.constant 0 : index
    %c3_32 = arith.constant 3 : index
    %c0_33 = arith.constant 0 : index
    %66 = vector.load %arg4[%c0_31, %c3_32, %c0_33] : memref<1x4x128xf32, #tpu.memory_space<vmem>>, vector<1x1x128xf32>
    %67 = vector.shape_cast %66 : vector<1x1x128xf32> to vector<1x128xf32>
    %68 = vector.shape_cast %65 : vector<1x128xf32> to vector<1x1x128xf32>
    tpu.vector_store %arg4[%c0_31, %c3_32, %c0_33], %68 {strides = array<i32>} : memref<1x4x128xf32, #tpu.memory_space<vmem>>, vector<1x1x128xf32>,
    return
  }
  func.func @transform_0(%arg0: i32, %arg1: i32) -> (i32, i32) {
    %c1_i32 = arith.constant 1 : i32
    %0 = arith.muli %arg0, %c1_i32 : i32
    %1 = arith.addi %0, %arg1 : i32
    %c0_i32 = arith.constant 0 : i32
    %2 = arith.minsi %1, %c0_i32 : i32
    %c0_i32_0 = arith.constant 0 : i32
    %c0_i32_1 = arith.constant 0 : i32
    return %2, %c0_i32_0 : i32, i32
  }
  func.func @transform_1(%arg0: i32, %arg1: i32) -> (i32, i32) {
    %c1_i32 = arith.constant 1 : i32
    %0 = arith.muli %arg0, %c1_i32 : i32
    %1 = arith.addi %0, %arg1 : i32
    %c0_i32 = arith.constant 0 : i32
    %2 = arith.minsi %1, %c0_i32 : i32
    %c0_i32_0 = arith.constant 0 : i32
    %c0_i32_1 = arith.constant 0 : i32
    return %2, %c0_i32_0 : i32, i32
  }
  func.func @transform_2(%arg0: i32, %arg1: i32) -> (i32, i32, i32) {
    %c0_i32 = arith.constant 0 : i32
    %c0_i32_0 = arith.constant 0 : i32
    %c0_i32_1 = arith.constant 0 : i32
    return %arg0, %c0_i32, %c0_i32_0 : i32, i32, i32
  }
}

</mosaic_0001>

<bundles_post_ra>
// kernel: tpu_custom_call.1
= control target key start
LH: loop header
LB: loop body
LE: loop exit
PB: predicated region body
PF: predicated region fallthrough
CT: control target
= control target key end

     0   :  { %7 = vsyncpa [#allocation3], 0  ;;  %s441_s0 = inlined_call_operand.hbm [shape: f32[16,128], index: 0, kind: input, shape index: {}]   ;;  %s442_s1 = inlined_call_operand.hbm [shape: s8[16,128], index: 1, kind: input, shape index: {}]   ;;  %s443_s2 = inlined_call_operand.hbm [shape: f32[1,4,128], index: 2, kind: output, shape index: {}]  }
   0x1   :  { %8 = vsyncpa [#allocation6], 0 }
   0x2   :  { %9 = vsyncpa [#allocation4], 0 }
   0x3   :  { %20 = vsyncadd [#allocation3], 256  ;;  %s367_s9 = smov [#allocation2]  }
   0x4   :  { %s25_s10 = sshll.u32 %s367_s9, 4  ;;  %s26_s10 = int_to_ptr.vmem [resolvable:$true] %s25_s10 }
   0x5   :  { %s309_s11 = scalar_lea.vmem %s26_s10, 256  ;;  %s313_s12 = scalar_lea.vmem %s26_s10, 512 }
   0x6   :  { %p310_p0 = scmp.ne.s32.totalorder %s26_s10, %s309_s11  ;;  %p314_p1 = scmp.lt.s32.totalorder %s26_s10, %s26_s10 }
   0x7   :  { %p315_p2 = scmp.lt.s32.totalorder %s313_s12, %s309_s11 }
   0x9   :  { %p316_p3 = por %p315_p2, %p314_p1 }
   0xb   :  { %p317_p4 = pnand %p316_p3, %p310_p0 }
   0xd   :  { %320 = shalt.err (!%p317_p4)
}
   0xe   :  { %s368_s13 = smov 128   ;;  %s369_s14 = smov 8  }
   0xf   :  { %31 = dma.hbm_to_vmem [thread:$0]  %s441_s0, 256, %s26_s10, [#allocation3], %s368_s13, %s368_s13, %s369_s14  }
  0x10   :  { %42 = vsyncadd [#allocation6], 64  ;;  %s370_s17 = smov [#allocation5]  }
  0x11   :  { %s47_s18 = sshll.u32 %s370_s17, 4  ;;  %s48_s18 = int_to_ptr.vmem [resolvable:$true] %s47_s18 }
  0x12   :  { %s329_s19 = scalar_lea.vmem %s48_s18, 64  ;;  %s333_s20 = scalar_lea.vmem %s48_s18, 128 }
  0x13   :  { %p330_p5 = scmp.ne.s32.totalorder %s48_s18, %s329_s19  ;;  %p334_p6 = scmp.lt.s32.totalorder %s48_s18, %s48_s18 }
  0x14   :  { %p335_p7 = scmp.lt.s32.totalorder %s333_s20, %s329_s19 }
  0x16   :  { %p336_p8 = por %p335_p7, %p334_p6 }
  0x18   :  { %p337_p9 = pnand %p336_p8, %p330_p5 }
  0x1a   :  { %340 = shalt.err (!%p337_p9)
}
  0x1b   :  { %s371_s21 = smov 32   ;;  %s372_s22 = smov 2  }
  0x1c   :  { %53 = dma.hbm_to_vmem [thread:$0]  %s442_s1, 64, %s48_s18, [#allocation6], %s371_s21, %s371_s21, %s372_s22  }
  0x1d   :  { %361 = dma.done.wait [#allocation3], 512  }
  0x1e   :  { %362 = vsyncadd [#allocation3], 4294966784 }
  0x1f   :  { %363 = dma.done.wait [#allocation6], 128  }
  0x20   :  { %364 = vsyncadd [#allocation6], 4294967168  ;;  %v373_v0 = vmov 0.0   ;;  %v282_v1 = vld [vmem:[#allocation5] sm:$0xf]   ;;  %v398_v3 = vld [vmem:[#allocation2 + $0x8] sm:$0xff] }
  0x21   :  { %76 = vst [vmem:[#allocation7] sm:$0xf] %v373_v0  ;;  %v396_v2 = vld [vmem:[#allocation2] sm:$0xff]  ;;  %v283_v4 = vunpack.c.0.s8 %v282_v1  ;;  %v284_v5 = vunpack.c.1.s8 %v282_v1  ;;  %v122_v7 = vand.u32 2147483647, %v398_v3  ;;  %v174_v54 = vmax.f32 %v398_v3, 0.0 }
  0x22   :  { %v121_v6 = vand.u32 2147483647, %v396_v2  ;;  %v173_v51 = vmax.f32 %v396_v2, 0.0  ;;  %s374_s0 = smov [#allocation7]  }
  0x23   :  { %vm402_vm0 = vcmp.eq.s32.totalorder %v283_v4, 1  ;;  %vm406_vm1 = vcmp.eq.s32.totalorder %v284_v5, 1  ;;  %vm410_vm2 = vcmp.eq.s32.totalorder %v283_v4, 0  ;;  %vm414_vm3 = vcmp.eq.s32.totalorder %v284_v5, 0  ;;  %s263_s1 = sshll.u32 %s374_s0, 4  ;;  %s264_s1 = int_to_ptr.vmem [resolvable:$true] %s263_s1 }
  0x24   :  { %v277_v12 = vsel %vm402_vm0, 1.0, %v373_v0  ;;  %v278_v13 = vsel %vm406_vm1, 1.0, %v373_v0  ;;  %v279_v14 = vsel %vm410_vm2, 1.0, %v373_v0  ;;  %v280_v15 = vsel %vm414_vm3, 1.0, %v373_v0  ;;  %s341_s25 = scalar_lea.vmem %s264_s1, 64  ;;  %p346_p11 = scmp.lt.s32.totalorder %s264_s1, %s264_s1 }
  0x25   :  { %v194_v16 = vadd.f32 %v278_v13, %v277_v12  ;;  %v214_v17 = vadd.f32 %v280_v15, %v279_v14  ;;  %v125_v18 = vsub.f32 0.0, %v121_v6  ;;  %v126_v19 = vsub.f32 0.0, %v122_v7  ;;  %p342_p10 = scmp.ne.s32.totalorder %s264_s1, %s341_s25  ;;  %p347_p12 = scmp.lt.s32.totalorder %s341_s25, %s341_s25 }
  0x27   :  { %v197_v20 = vrot.slane %v194_v16, 4  ;;  %v217_v21 = vrot.slane %v214_v17, 4  ;;  %v129_v22 = vmul.f32 1.442695, %v125_v18  ;;  %v131_v23 = vmul.f32 1.442695, %v126_v19  ;;  %p348_p13 = por %p347_p12, %p346_p11 }
  0x28   :  { %v185_v32 = vld [vmem:[#allocation7] sm:$0x1]  ;;  %v205_v33 = vld [vmem:[#allocation7 + $0x1] sm:$0x1]  ;;  %v225_v18 = vld [vmem:[#allocation7 + $0x2] sm:$0x1] }
  0x29   :  { %v198_v24 = vadd.f32 %v197_v20, %v194_v16  ;;  %v218_v25 = vadd.f32 %v217_v21, %v214_v17  ;;  %293 = vpow2.f32 %v129_v22  ;;  %v241_v16 = vld [vmem:[#allocation7 + $0x3] sm:$0x1]  ;;  %p349_p0 = pnand %p348_p13, %p342_p10 }
  0x2a   :  { %295 = vpow2.f32 %v131_v23 }
  0x2b   :  { %v199_v26 = vrot.slane %v198_v24, 2  ;;  %v219_v27 = vrot.slane %v218_v25, 2 }
  0x2d   :  { %v200_v28 = vadd.f32 %v199_v26, %v198_v24  ;;  %v220_v29 = vadd.f32 %v219_v27, %v218_v25 }
  0x2f   :  { %v201_v30 = vrot.slane %v200_v28, 1  ;;  %v221_v31 = vrot.slane %v220_v29, 1 }
  0x31   :  { %v202_v34 = vadd.f32 %v201_v30, %v200_v28  ;;  %v222_v35 = vadd.f32 %v221_v31, %v220_v29 }
  0x33   :  { %v203_v36 = vadd.f32 %v202_v34, %v185_v32  ;;  %v223_v37 = vadd.f32 %v222_v35, %v205_v33 }
  0x35   :  { %204 = vst [vmem:[#allocation7] sm:$0x1] %v203_v36  ;;  %224 = vst [vmem:[#allocation7 + $0x1] sm:$0x1] %v223_v37 }
  0x36   :  { %v294_v38 = vpop.eup %293 }
  0x37   :  { %v296_v39 = vpop.eup %295  ;;  %v137_v40 = vadd.f32 1.0, %v294_v38  ;;  %v140_v42 = vmul.f32 -0.5, %v294_v38  ;;  %v143_v45 = vand.u32 2147483647, %v294_v38 }
  0x38   :  { %v146_v41 = vadd.f32 1.0, %v296_v39  ;;  %v149_v43 = vmul.f32 -0.5, %v296_v39  ;;  %v152_v47 = vand.u32 2147483647, %v296_v39 }
  0x39   :  { %297 = vlog2.f32 %v137_v40  ;;  %v141_v44 = vadd.f32 1.0, %v140_v42  ;;  %vm144_vm4 = vcmp.lt.f32.partialorder %v143_v45, 0.0004427343 }
  0x3a   :  { %299 = vlog2.f32 %v146_v41  ;;  %v150_v46 = vadd.f32 1.0, %v149_v43  ;;  %vm153_vm5 = vcmp.lt.f32.partialorder %v152_v47, 0.0004427343 }
  0x3b   :  { %v142_v48 = vmul.f32 %v294_v38, %v141_v44 }
  0x3c   :  { %v151_v50 = vmul.f32 %v296_v39, %v150_v46 }
  0x46   :  { %v298_v49 = vpop.eup %297 }
  0x47   :  { %v300_v52 = vpop.eup %299  ;;  %v139_v53 = vmul.f32 0.6931472, %v298_v49 }
  0x48   :  { %v148_v55 = vmul.f32 0.6931472, %v300_v52 }
  0x49   :  { %v145_v56 = vsel %vm144_vm4, %v142_v48, %v139_v53 }
  0x4a   :  { %v154_v57 = vsel %vm153_vm5, %v151_v50, %v148_v55  ;;  %v177_v58 = vadd.f32 %v173_v51, %v145_v56 }
  0x4b   :  { %v178_v59 = vadd.f32 %v174_v54, %v154_v57 }
  0x4c   :  { %v181_v60 = vsub.f32 %v177_v58, %v396_v2  ;;  %v242_v61 = vsel %vm410_vm2, %v177_v58, 0.0 }
  0x4d   :  { %v182_v62 = vsub.f32 %v178_v59, %v398_v3  ;;  %v243_v63 = vsel %vm414_vm3, %v178_v59, 0.0 }
  0x4e   :  { %v226_v0 = vsel %vm402_vm0, %v181_v60, 0.0  ;;  %v246_v1 = vadd.f32 %v243_v63, %v242_v61 }
  0x4f   :  { %v227_v4 = vsel %vm406_vm1, %v182_v62, 0.0 }
  0x50   :  { %v230_v5 = vadd.f32 %v227_v4, %v226_v0  ;;  %v249_v6 = vrot.slane %v246_v1, 4 }
  0x52   :  { %v233_v7 = vrot.slane %v230_v5, 4  ;;  %v250_v12 = vadd.f32 %v249_v6, %v246_v1 }
  0x54   :  { %v234_v2 = vadd.f32 %v233_v7, %v230_v5  ;;  %v251_v13 = vrot.slane %v250_v12, 2 }
  0x56   :  { %v235_v10 = vrot.slane %v234_v2, 2  ;;  %v252_v14 = vadd.f32 %v251_v13, %v250_v12 }
  0x58   :  { %v236_v15 = vadd.f32 %v235_v10, %v234_v2  ;;  %v253_v3 = vrot.slane %v252_v14, 1 }
  0x5a   :  { %v237_v11 = vrot.slane %v236_v15, 1  ;;  %v254_v17 = vadd.f32 %v253_v3, %v252_v14 }
  0x5c   :  { %v238_v8 = vadd.f32 %v237_v11, %v236_v15  ;;  %v255_v19 = vadd.f32 %v254_v17, %v241_v16 }
  0x5e   :  { %v239_v9 = vadd.f32 %v238_v8, %v225_v18  ;;  %256 = vst [vmem:[#allocation7 + $0x3] sm:$0x1] %v255_v19 }
  0x60   :  { %240 = vst [vmem:[#allocation7 + $0x2] sm:$0x1] %v239_v9 }
  0x61   :  { %352 = shalt.err (!%p349_p0)
}
  0x62   :  { %266 = dma.vmem_to_hbm [thread:$0]  %s264_s1, 64, %s443_s2, [#allocation4]  }
  0x63   :  { %365 = dma.done.wait [#allocation4], 64  }
  0x64   :  { %366 = vsyncadd [#allocation4], 4294967232 }
  0x65   :  { %270 = vsyncpa [#allocation3], 1 }
  0x66   :  { %271 = vsyncpa [#allocation6], 1 }
  0x67   :  { %272 = vsyncpa [#allocation4], 1 }

</bundles_post_ra>
